<compile_context>
chip_gen: v7x
topology: tpu7x:2x2x1
jax: 0.10.0
libtpu: 0.0.40
codegen_flags: <defaults>
</compile_context>

<pallas_src>
import functools

import jax
import jax.numpy as jnp
from jax.experimental import pallas as pl
from jax.experimental.pallas import tpu as pltpu


def _round_up(x, m):
    return (x + m - 1) // m * m


def _pad2(a, rows, cols):
    return jnp.pad(a, ((0, rows - a.shape[0]), (0, cols - a.shape[1])))


def ggn_acc_kernel(x_ref,      # (tile_n, dim)        matmul dtype
                   ti_ref,     # (tile_i, hid_p)      elementwise dtype: x[i]@Wn2e_b + b_n2e (+ ones lane)
                   adj_ref,    # (tile_i, tile_n)     matmul dtype
                   wa_ref,     # (dim,   hid_p)       matmul dtype: starter half of Wn2e
                   we2e_ref,   # (hid_p, hid_p)       matmul dtype (b_e2e folded into row `hid` when fold_bias)
                   *rest,      # [b2_ref (1, hid_p) f32 if not fold_bias], out_ref (tile_i, hid_p) f32
                   tile_i, fold_bias):
    if fold_bias:
        (out_ref,) = rest
        b2_ref = None
    else:
        b2_ref, out_ref = rest

    k = pl.program_id(1)
    cdt = x_ref.dtype          # matmul dtype
    ew = ti_ref.dtype          # elementwise dtype

    @pl.when(k == 0)
    def _init():
        out_ref[...] = jnp.zeros_like(out_ref)

    # Target-independent half of relu(n2e(cat(starter, ender))): computed ONCE
    # per grid step and shared by all tile_i targets in this block.
    g = jnp.dot(x_ref[...], wa_ref[...],
                preferred_element_type=jnp.float32).astype(ew)     # (tile_n, hid_p)

    ti = ti_ref[...]                                               # (tile_i, hid_p)
    adj = adj_ref[...]                                             # (tile_i, tile_n)
    we2e = we2e_ref[...]                                           # (hid_p, hid_p)

    contribs = []
    for t in range(tile_i):                    # static unroll; tile_i is small (~8)
        # relu(n2e(cat(starter, ender)))  ==  relu(x @ Wa + (x[i] @ Wb + b_n2e))
        h = jnp.maximum(g + ti[t:t + 1, :], 0).astype(cdt)         # (tile_n, hid_p)
        # relu(e2e(h)); b_e2e folded into We2e via the ones lane when fold_bias
        h2 = jnp.dot(h, we2e, preferred_element_type=jnp.float32)
        if not fold_bias:
            h2 = h2 + b2_ref[...]
        h2 = jnp.maximum(h2, 0).astype(cdt)
        # adjacency mask + node reduction fused as one (1,tile_n)@(tile_n,hid_p) MXU op
        contribs.append(jnp.dot(adj[t:t + 1, :], h2,
                                preferred_element_type=jnp.float32))
    out_ref[...] += jnp.concatenate(contribs, axis=0)              # (tile_i, hid_p)


def init_params(key, dim, hid):
    """Deterministic synthetic parameters in (in_features, out_features) layout."""
    ks = jax.random.split(key, 8)

    def u(k, shape, fan_in):
        bound = 1.0 / jnp.sqrt(fan_in)
        return jax.random.uniform(k, shape, jnp.float32, -bound, bound)

    return {
        "wn2e": u(ks[0], (2 * dim, hid), 2 * dim),
        "bn2e": u(ks[1], (1, hid), 2 * dim),
        "we2e": u(ks[2], (hid, hid), hid),
        "be2e": u(ks[3], (1, hid), hid),
        "we2n": u(ks[4], (hid, hid), hid),
        "be2n": u(ks[5], (1, hid), hid),
        "wout": u(ks[6], (dim + hid, dim), dim + hid),
        "bout": u(ks[7], (1, dim), dim + hid),
    }


def ggn_io_forward_batched(params, x, adj_cols, i_idx, *,
                           matmul_dtype=jnp.bfloat16,
                           elementwise_dtype=jnp.float32,
                           tile_n=None, tile_i=8):
    """Evaluate GGN_IO for a batch of target nodes with ONE pallas_call.

    x:         (node_num, dim)
    adj_cols:  (num_i, node_num)  -- row g is the adjacency column for target i_idx[g]
    i_idx:     (num_i,) int32
    returns:   (num_i, dim) float32
    """
    node_num, dim = x.shape
    hid = params["we2e"].shape[0]
    i_idx = jnp.asarray(i_idx, dtype=jnp.int32)
    num_i = int(i_idx.shape[0])
    assert adj_cols.shape == (num_i, node_num)

    f32 = jnp.float32
    cdt = matmul_dtype
    ew = elementwise_dtype

    hid_p = _round_up(hid, 128)          # lane-dense hidden width
    fold = hid < hid_p                   # free padding lane -> fold b_e2e onto the MXU

    if tile_i % 8 != 0:
        raise ValueError("tile_i must be a multiple of 8")
    num_i_p = _round_up(num_i, tile_i)

    # ---- tile_n heuristic: biggest node tile whose live set fits ~6 MiB ----
    bw = jnp.dtype(cdt).itemsize
    be = jnp.dtype(ew).itemsize
    bytes_per_row = hid_p * (4 + 2 * bw + be)          # g + h + h2 per node row
    if tile_n is None:
        cap = max(512, min(2048, (6 * 2**20) // max(bytes_per_row, 1)))
        if node_num <= cap:
            tile_n = _round_up(node_num, 8)            # single node tile
        else:
            tile_n = (cap // 128) * 128
    n_pad = _round_up(node_num, tile_n)
    nk = n_pad // tile_n
    if nk > 1 and tile_n % 128 != 0:
        raise ValueError("tile_n must be a multiple of 128 when tiling over nodes")
    if tile_n % 8 != 0:
        raise ValueError("tile_n must be a multiple of 8")

    # ---- pack / pad operands (wrapper-side, plain XLA) ----------------------
    x32 = x.astype(f32)
    # NOTE: zero-padded tail rows of x are neutralized ONLY by the zero-padded
    # adjacency tail below -- keep these two paddings in sync.
    x_p = _pad2(x32, n_pad, dim).astype(cdt)                          # (n_pad, dim)
    # adj in matmul dtype: exact for 0/1 adjacency (use f32 if weighted).
    adj_p = _pad2(adj_cols.astype(f32), num_i_p, n_pad).astype(cdt)   # (num_i_p, n_pad)

    i_idx_p = jnp.pad(i_idx, (0, num_i_p - num_i))                    # pad with node 0
    xi_all = x32[i_idx_p]                                             # (num_i_p, dim)

    # Per-target term hoisted OUT of the kernel (batched XLA GEMM):
    # ti = x[i] @ Wn2e_b + b_n2e, same quantization points as the kernel matmuls.
    ti = jnp.dot(xi_all.astype(cdt), params["wn2e"][dim:].astype(cdt),
                 preferred_element_type=f32) + params["bn2e"]         # (num_i_p, hid)
    ti_aug = jnp.zeros((num_i_p, hid_p), f32).at[:, :hid].set(ti)
    if fold:
        ti_aug = ti_aug.at[:, hid].set(1.0)      # ones lane -> relu gives exactly 1
    ti_aug = ti_aug.astype(ew)

    wa = jnp.zeros((dim, hid_p), f32).at[:, :hid].set(
        params["wn2e"][:dim]).astype(cdt)                             # (dim, hid_p)
    we2e_aug = jnp.zeros((hid_p, hid_p), f32).at[:hid, :hid].set(params["we2e"])
    if fold:
        we2e_aug = we2e_aug.at[hid, :hid].set(params["be2e"][0])      # bias row (ones lane)
    we2e_aug = we2e_aug.astype(cdt)
    b2 = jnp.zeros((1, hid_p), f32).at[:, :hid].set(params["be2e"])   # only used if not fold

    # ---- grid / block specs --------------------------------------------------
    const2 = lambda gi, k: (0, 0)
    in_specs = [
        pl.BlockSpec((tile_n, dim), lambda gi, k: (k, 0)),        # x node tile
        pl.BlockSpec((tile_i, hid_p), lambda gi, k: (gi, 0)),     # ti target block
        pl.BlockSpec((tile_i, tile_n), lambda gi, k: (gi, k)),    # adjacency block
        pl.BlockSpec((dim, hid_p), const2),                       # Wn2e (starter half), resident
        pl.BlockSpec((hid_p, hid_p), const2),                     # We2e (+ folded b_e2e), resident
    ]
    inputs = [x_p, ti_aug, adj_p, wa, we2e_aug]
    if not fold:
        in_specs.append(pl.BlockSpec((1, hid_p), const2))         # explicit b_e2e
        inputs.append(b2)

    # VMEM budget estimate -> explicit scoped limit (defaults: 16 MiB v5e, 32 MiB v6e/v7x).
    est = 2 * (dim * hid_p + hid_p * hid_p + hid_p) * bw              # resident weights (x2 margin)
    est += 2 * (tile_n * dim + tile_i * tile_n) * bw + 2 * tile_i * hid_p * be
    est += 2 * tile_i * hid_p * 4                                     # accumulator output
    est += tile_n * bytes_per_row + tile_n * hid_p * 4                # in-flight temporaries + slack
    vmem_limit = int(min(48 * 2**20, max(32 * 2**20, 2 * est)))

    grid_spec = pltpu.PrefetchScalarGridSpec(
        num_scalar_prefetch=0,
        grid=(num_i_p // tile_i, nk),                 # (target blocks, node tiles)
        in_specs=in_specs,
        out_specs=pl.BlockSpec((tile_i, hid_p), lambda gi, k: (gi, 0)),
        scratch_shapes=[],
    )

    acc = pl.pallas_call(
        functools.partial(ggn_acc_kernel, tile_i=tile_i, fold_bias=fold),
        grid_spec=grid_spec,
        out_shape=jax.ShapeDtypeStruct((num_i_p, hid_p), jnp.float32),
        compiler_params=pltpu.CompilerParams(
            # Target-block axis is "parallel" (megacore sharding on v7x when
            # num_i_p // tile_i >= 2); node axis is the reduction -> "arbitrary".
            dimension_semantics=("parallel", "arbitrary"),
            vmem_limit_bytes=vmem_limit),
    )(*inputs)

    # ---- epilogue as batched XLA GEMMs over all real targets (full MXU M) ---
    acc = acc[:num_i, :hid]                                           # (num_i, hid)
    dotc = lambda a, b: jnp.dot(a.astype(cdt), b.astype(cdt),
                                preferred_element_type=f32)
    s = dotc(acc, params["we2n"]) + params["be2n"]                    # e2n (no relu)
    xi = x32[i_idx]                                                   # un-quantized residual input
    o = dotc(xi, params["wout"][:dim]) + dotc(s, params["wout"][dim:]) + params["bout"]
    return xi + o                                                     # (num_i, dim) f32


def ggn_io_forward(params, x, adj_col, i, **kw):
    """Single (x, adj_col, i) -> (dim,) call preserving the module interface."""
    out = ggn_io_forward_batched(params, x, adj_col[None, :],
                                 jnp.asarray([i], dtype=jnp.int32), **kw)
    return out[0]


def ggn_io_reference(params, x, adj_col, i, matmul_dtype=jnp.float32):
    """Pure-JAX reference mirroring the PyTorch forward (optionally with the
    same matmul quantization points as the kernel, for tight comparison)."""
    node_num, dim = x.shape
    f = jnp.float32
    c = lambda a: a.astype(matmul_dtype)
    dot = lambda a, b: jnp.dot(c(a), c(b), preferred_element_type=f)

    starter = x.astype(f)
    xi = starter[i][None, :]
    ender = jnp.broadcast_to(xi, (node_num, dim))
    h = jnp.concatenate([starter, ender], axis=1)
    h = jax.nn.relu(dot(h, params["wn2e"]) + params["bn2e"])
    h = jax.nn.relu(dot(h, params["we2e"]) + params["be2e"])
    s = dot(adj_col[None, :], h)                      # mask + sum over nodes
    s = dot(s, params["we2n"]) + params["be2n"]
    o = dot(xi, params["wout"][:dim]) + dot(s, params["wout"][dim:]) + params["bout"]
    return (xi + o)[0]


if __name__ == "__main__":
    key = jax.random.PRNGKey(0)
    kp, kx, ka, kx2, ka2, kp2 = jax.random.split(key, 6)

    # ---- small graph: node_num=8, dim=4, hid=32 (folded-bias path) ----------
    node_num, dim, hid = 8, 4, 32
    params = init_params(kp, dim, hid)
    x = jax.random.normal(kx, (node_num, dim), jnp.float32)
    adj = (jax.random.uniform(ka, (node_num, node_num)) > 0.5).astype(jnp.float32)
    i_idx = jnp.arange(node_num, dtype=jnp.int32)
    adj_cols = adj.T                                   # row g = adj[:, g]

    ref_f32 = jnp.stack([ggn_io_reference(params, x, adj[:, i], i)
                         for i in range(node_num)])

    # f32 matmuls: tight correctness check
    out_f32 = jax.block_until_ready(
        ggn_io_forward_batched(params, x, adj_cols, i_idx,
                               matmul_dtype=jnp.float32))
    assert out_f32.shape == (node_num, dim)
    assert jnp.allclose(out_f32, ref_f32, atol=1e-4, rtol=1e-4), (out_f32, ref_f32)

    # single-(adj_col, i) call, original module interface
    out_single = jax.block_until_ready(
        ggn_io_forward(params, x, adj[:, 2], 2, matmul_dtype=jnp.float32))
    assert out_single.shape == (dim,)
    assert jnp.allclose(out_single, ref_f32[2], atol=1e-4, rtol=1e-4)

    # bf16 matmul operands, f32 elementwise (safe on all generations)
    ref_bf16 = jnp.stack([ggn_io_reference(params, x, adj[:, i], i,
                                           matmul_dtype=jnp.bfloat16)
                          for i in range(node_num)])
    scale = jnp.max(jnp.abs(ref_bf16)) + 1.0
    out_bf16 = jax.block_until_ready(
        ggn_io_forward_batched(params, x, adj_cols, i_idx,
                               matmul_dtype=jnp.bfloat16))
    assert jnp.max(jnp.abs(out_bf16 - ref_bf16)) <= 2e-2 * scale

    # bf16 matmuls + bf16 elementwise (v6e / v7x fast path)
    out_bf16e = jax.block_until_ready(
        ggn_io_forward_batched(params, x, adj_cols, i_idx,
                               matmul_dtype=jnp.bfloat16,
                               elementwise_dtype=jnp.bfloat16))
    assert jnp.max(jnp.abs(out_bf16e - ref_bf16)) <= 6e-2 * scale

    # ---- hid == 128 (== hid_p): exercises the explicit-bias (non-fold) path --
    params128 = init_params(kp2, dim, 128)
    ref128 = jnp.stack([ggn_io_reference(params128, x, adj[:, i], i)
                        for i in range(node_num)])
    out128 = jax.block_until_ready(
        ggn_io_forward_batched(params128, x, adj_cols, i_idx,
                               matmul_dtype=jnp.float32))
    assert jnp.allclose(out128, ref128, atol=1e-3, rtol=1e-3), (out128, ref128)

    # ---- larger graph: node tiling + k-accumulation + target padding --------
    big_n, num_i = 1024, 4
    xb = jax.random.normal(kx2, (big_n, dim), jnp.float32)
    adjb = (jax.random.uniform(ka2, (big_n, big_n)) > 0.5).astype(jnp.float32)
    ib = jnp.asarray([0, 17, 500, 1023], dtype=jnp.int32)
    adjb_cols = adjb[:, ib].T
    out_big = jax.block_until_ready(
        ggn_io_forward_batched(params, xb, adjb_cols, ib,
                               matmul_dtype=jnp.bfloat16, tile_n=256))
    ref_big = jnp.stack([ggn_io_reference(params, xb, adjb[:, int(i)], int(i),
                                          matmul_dtype=jnp.bfloat16)
                         for i in ib])
    scaleb = jnp.max(jnp.abs(ref_big)) + 1.0
    assert out_big.shape == (num_i, dim)
    assert jnp.max(jnp.abs(out_big - ref_big)) <= 2e-2 * scaleb

    print("KERNEL_OK")
</pallas_src>

<mosaic_0001>
module attributes {stable_mosaic.version = 11 : i64} {
  func.func @ggn_acc_kernel(%arg0: i32, %arg1: i32, %arg2: memref<8x4xf32, #tpu.memory_space<vmem>>, %arg3: memref<8x128xf32, #tpu.memory_space<vmem>>, %arg4: memref<8x8xf32, #tpu.memory_space<vmem>>, %arg5: memref<4x128xf32, #tpu.memory_space<vmem>>, %arg6: memref<128x128xf32, #tpu.memory_space<vmem>>, %arg7: memref<8x128xf32, #tpu.memory_space<vmem>>) attributes {dimension_semantics = [#tpu.dimension_semantics<parallel>, #tpu.dimension_semantics<arbitrary>], iteration_bounds = array<i64: 1, 1>, scalar_prefetch = 0 : i64, scratch_operands = 0 : i64, tpu.core_type = #tpu.core_type<tc>, window_params = [{transform_indices = @transform_0, window_bounds = array<i64: 8, 4>}, {transform_indices = @transform_1, window_bounds = array<i64: 8, 128>}, {transform_indices = @transform_2, window_bounds = array<i64: 8, 8>}, {pipeline_mode = #tpu.pipeline_mode<synchronous>, transform_indices = @transform_3, window_bounds = array<i64: 4, 128>}, {pipeline_mode = #tpu.pipeline_mode<synchronous>, transform_indices = @transform_4, window_bounds = array<i64: 128, 128>}, {transform_indices = @transform_5, window_bounds = array<i64: 8, 128>}]} {
    %c0_i32 = arith.constant 0 : i32
    %0 = arith.cmpi eq, %arg1, %c0_i32 : i32
    %1 = arith.extui %0 : i1 to i32
    %c0_i32_0 = arith.constant 0 : i32
    %2 = arith.cmpi ne, %1, %c0_i32_0 : i32
    scf.if %2 {
      %cst_46 = arith.constant 0.000000e+00 : f32
      %93 = vector.broadcast %cst_46 : f32 to vector<8x128xf32>
      %c0_47 = arith.constant 0 : index
      %c0_48 = arith.constant 0 : index
      %94 = vector.load %arg7[%c0_47, %c0_48] : memref<8x128xf32, #tpu.memory_space<vmem>>, vector<8x128xf32>
      tpu.vector_store %arg7[%c0_47, %c0_48], %93 {strides = array<i32>} : memref<8x128xf32, #tpu.memory_space<vmem>>, vector<8x128xf32>,
    } else {
    }
    %c0 = arith.constant 0 : index
    %c0_1 = arith.constant 0 : index
    %3 = vector.load %arg2[%c0, %c0_1] : memref<8x4xf32, #tpu.memory_space<vmem>>, vector<8x4xf32>
    %c0_2 = arith.constant 0 : index
    %c0_3 = arith.constant 0 : index
    %4 = vector.load %arg5[%c0_2, %c0_3] : memref<4x128xf32, #tpu.memory_space<vmem>>, vector<4x128xf32>
    %cst = arith.constant dense<0.000000e+00> : vector<8x128xf32>
    %5 = tpu.matmul %3, %4, %cst {dimension_numbers = #tpu.dot_dimension_numbers<[1], [0], [0], [1], [0, 0, 1, 1], [], []>} : vector<8x4xf32>, vector<4x128xf32>, vector<8x128xf32> -> vector<8x128xf32>
    %c0_4 = arith.constant 0 : index
    %c0_5 = arith.constant 0 : index
    %6 = vector.load %arg3[%c0_4, %c0_5] : memref<8x128xf32, #tpu.memory_space<vmem>>, vector<8x128xf32>
    %c0_6 = arith.constant 0 : index
    %c0_7 = arith.constant 0 : index
    %7 = vector.load %arg4[%c0_6, %c0_7] : memref<8x8xf32, #tpu.memory_space<vmem>>, vector<8x8xf32>
    %c0_8 = arith.constant 0 : index
    %c0_9 = arith.constant 0 : index
    %8 = vector.load %arg6[%c0_8, %c0_9] : memref<128x128xf32, #tpu.memory_space<vmem>>, vector<128x128xf32>
    %9 = vector.extract_strided_slice %6 {offsets = [0, 0], sizes = [1, 128], strides = [1, 1]} : vector<8x128xf32> to vector<1x128xf32>
    %10 = vector.broadcast %9 : vector<1x128xf32> to vector<8x128xf32>
    %11 = arith.addf %5, %10 : vector<8x128xf32>
    %cst_10 = arith.constant 0.000000e+00 : f32
    %12 = vector.broadcast %cst_10 : f32 to vector<8x128xf32>
    %13 = arith.maximumf %11, %12 : vector<8x128xf32>
    %cst_11 = arith.constant dense<0.000000e+00> : vector<8x128xf32>
    %14 = tpu.matmul %13, %8, %cst_11 {dimension_numbers = #tpu.dot_dimension_numbers<[1], [0], [0], [1], [0, 0, 1, 1], [], []>} : vector<8x128xf32>, vector<128x128xf32>, vector<8x128xf32> -> vector<8x128xf32>
    %cst_12 = arith.constant 0.000000e+00 : f32
    %15 = vector.broadcast %cst_12 : f32 to vector<8x128xf32>
    %16 = arith.maximumf %14, %15 : vector<8x128xf32>
    %17 = vector.extract_strided_slice %7 {offsets = [0, 0], sizes = [1, 8], strides = [1, 1]} : vector<8x8xf32> to vector<1x8xf32>
    %cst_13 = arith.constant dense<0.000000e+00> : vector<1x128xf32>
    %18 = tpu.matmul %17, %16, %cst_13 {dimension_numbers = #tpu.dot_dimension_numbers<[1], [0], [0], [1], [0, 0, 1, 1], [], []>} : vector<1x8xf32>, vector<8x128xf32>, vector<1x128xf32> -> vector<1x128xf32>
    %19 = vector.extract_strided_slice %6 {offsets = [1, 0], sizes = [1, 128], strides = [1, 1]} : vector<8x128xf32> to vector<1x128xf32>
    %20 = vector.broadcast %19 : vector<1x128xf32> to vector<8x128xf32>
    %21 = arith.addf %5, %20 : vector<8x128xf32>
    %cst_14 = arith.constant 0.000000e+00 : f32
    %22 = vector.broadcast %cst_14 : f32 to vector<8x128xf32>
    %23 = arith.maximumf %21, %22 : vector<8x128xf32>
    %cst_15 = arith.constant dense<0.000000e+00> : vector<8x128xf32>
    %24 = tpu.matmul %23, %8, %cst_15 {dimension_numbers = #tpu.dot_dimension_numbers<[1], [0], [0], [1], [0, 0, 1, 1], [], []>} : vector<8x128xf32>, vector<128x128xf32>, vector<8x128xf32> -> vector<8x128xf32>
    %cst_16 = arith.constant 0.000000e+00 : f32
    %25 = vector.broadcast %cst_16 : f32 to vector<8x128xf32>
    %26 = arith.maximumf %24, %25 : vector<8x128xf32>
    %27 = vector.extract_strided_slice %7 {offsets = [1, 0], sizes = [1, 8], strides = [1, 1]} : vector<8x8xf32> to vector<1x8xf32>
    %cst_17 = arith.constant dense<0.000000e+00> : vector<1x128xf32>
    %28 = tpu.matmul %27, %26, %cst_17 {dimension_numbers = #tpu.dot_dimension_numbers<[1], [0], [0], [1], [0, 0, 1, 1], [], []>} : vector<1x8xf32>, vector<8x128xf32>, vector<1x128xf32> -> vector<1x128xf32>
    %29 = vector.extract_strided_slice %6 {offsets = [2, 0], sizes = [1, 128], strides = [1, 1]} : vector<8x128xf32> to vector<1x128xf32>
    %30 = vector.broadcast %29 : vector<1x128xf32> to vector<8x128xf32>
    %31 = arith.addf %5, %30 : vector<8x128xf32>
    %cst_18 = arith.constant 0.000000e+00 : f32
    %32 = vector.broadcast %cst_18 : f32 to vector<8x128xf32>
    %33 = arith.maximumf %31, %32 : vector<8x128xf32>
    %cst_19 = arith.constant dense<0.000000e+00> : vector<8x128xf32>
    %34 = tpu.matmul %33, %8, %cst_19 {dimension_numbers = #tpu.dot_dimension_numbers<[1], [0], [0], [1], [0, 0, 1, 1], [], []>} : vector<8x128xf32>, vector<128x128xf32>, vector<8x128xf32> -> vector<8x128xf32>
    %cst_20 = arith.constant 0.000000e+00 : f32
    %35 = vector.broadcast %cst_20 : f32 to vector<8x128xf32>
    %36 = arith.maximumf %34, %35 : vector<8x128xf32>
    %37 = vector.extract_strided_slice %7 {offsets = [2, 0], sizes = [1, 8], strides = [1, 1]} : vector<8x8xf32> to vector<1x8xf32>
    %cst_21 = arith.constant dense<0.000000e+00> : vector<1x128xf32>
    %38 = tpu.matmul %37, %36, %cst_21 {dimension_numbers = #tpu.dot_dimension_numbers<[1], [0], [0], [1], [0, 0, 1, 1], [], []>} : vector<1x8xf32>, vector<8x128xf32>, vector<1x128xf32> -> vector<1x128xf32>
    %39 = vector.extract_strided_slice %6 {offsets = [3, 0], sizes = [1, 128], strides = [1, 1]} : vector<8x128xf32> to vector<1x128xf32>
    %40 = vector.broadcast %39 : vector<1x128xf32> to vector<8x128xf32>
    %41 = arith.addf %5, %40 : vector<8x128xf32>
    %cst_22 = arith.constant 0.000000e+00 : f32
    %42 = vector.broadcast %cst_22 : f32 to vector<8x128xf32>
    %43 = arith.maximumf %41, %42 : vector<8x128xf32>
    %cst_23 = arith.constant dense<0.000000e+00> : vector<8x128xf32>
    %44 = tpu.matmul %43, %8, %cst_23 {dimension_numbers = #tpu.dot_dimension_numbers<[1], [0], [0], [1], [0, 0, 1, 1], [], []>} : vector<8x128xf32>, vector<128x128xf32>, vector<8x128xf32> -> vector<8x128xf32>
    %cst_24 = arith.constant 0.000000e+00 : f32
    %45 = vector.broadcast %cst_24 : f32 to vector<8x128xf32>
    %46 = arith.maximumf %44, %45 : vector<8x128xf32>
    %47 = vector.extract_strided_slice %7 {offsets = [3, 0], sizes = [1, 8], strides = [1, 1]} : vector<8x8xf32> to vector<1x8xf32>
    %cst_25 = arith.constant dense<0.000000e+00> : vector<1x128xf32>
    %48 = tpu.matmul %47, %46, %cst_25 {dimension_numbers = #tpu.dot_dimension_numbers<[1], [0], [0], [1], [0, 0, 1, 1], [], []>} : vector<1x8xf32>, vector<8x128xf32>, vector<1x128xf32> -> vector<1x128xf32>
    %49 = vector.extract_strided_slice %6 {offsets = [4, 0], sizes = [1, 128], strides = [1, 1]} : vector<8x128xf32> to vector<1x128xf32>
    %50 = vector.broadcast %49 : vector<1x128xf32> to vector<8x128xf32>
    %51 = arith.addf %5, %50 : vector<8x128xf32>
    %cst_26 = arith.constant 0.000000e+00 : f32
    %52 = vector.broadcast %cst_26 : f32 to vector<8x128xf32>
    %53 = arith.maximumf %51, %52 : vector<8x128xf32>
    %cst_27 = arith.constant dense<0.000000e+00> : vector<8x128xf32>
    %54 = tpu.matmul %53, %8, %cst_27 {dimension_numbers = #tpu.dot_dimension_numbers<[1], [0], [0], [1], [0, 0, 1, 1], [], []>} : vector<8x128xf32>, vector<128x128xf32>, vector<8x128xf32> -> vector<8x128xf32>
    %cst_28 = arith.constant 0.000000e+00 : f32
    %55 = vector.broadcast %cst_28 : f32 to vector<8x128xf32>
    %56 = arith.maximumf %54, %55 : vector<8x128xf32>
    %57 = vector.extract_strided_slice %7 {offsets = [4, 0], sizes = [1, 8], strides = [1, 1]} : vector<8x8xf32> to vector<1x8xf32>
    %cst_29 = arith.constant dense<0.000000e+00> : vector<1x128xf32>
    %58 = tpu.matmul %57, %56, %cst_29 {dimension_numbers = #tpu.dot_dimension_numbers<[1], [0], [0], [1], [0, 0, 1, 1], [], []>} : vector<1x8xf32>, vector<8x128xf32>, vector<1x128xf32> -> vector<1x128xf32>
    %59 = vector.extract_strided_slice %6 {offsets = [5, 0], sizes = [1, 128], strides = [1, 1]} : vector<8x128xf32> to vector<1x128xf32>
    %60 = vector.broadcast %59 : vector<1x128xf32> to vector<8x128xf32>
    %61 = arith.addf %5, %60 : vector<8x128xf32>
    %cst_30 = arith.constant 0.000000e+00 : f32
    %62 = vector.broadcast %cst_30 : f32 to vector<8x128xf32>
    %63 = arith.maximumf %61, %62 : vector<8x128xf32>
    %cst_31 = arith.constant dense<0.000000e+00> : vector<8x128xf32>
    %64 = tpu.matmul %63, %8, %cst_31 {dimension_numbers = #tpu.dot_dimension_numbers<[1], [0], [0], [1], [0, 0, 1, 1], [], []>} : vector<8x128xf32>, vector<128x128xf32>, vector<8x128xf32> -> vector<8x128xf32>
    %cst_32 = arith.constant 0.000000e+00 : f32
    %65 = vector.broadcast %cst_32 : f32 to vector<8x128xf32>
    %66 = arith.maximumf %64, %65 : vector<8x128xf32>
    %67 = vector.extract_strided_slice %7 {offsets = [5, 0], sizes = [1, 8], strides = [1, 1]} : vector<8x8xf32> to vector<1x8xf32>
    %cst_33 = arith.constant dense<0.000000e+00> : vector<1x128xf32>
    %68 = tpu.matmul %67, %66, %cst_33 {dimension_numbers = #tpu.dot_dimension_numbers<[1], [0], [0], [1], [0, 0, 1, 1], [], []>} : vector<1x8xf32>, vector<8x128xf32>, vector<1x128xf32> -> vector<1x128xf32>
    %69 = vector.extract_strided_slice %6 {offsets = [6, 0], sizes = [1, 128], strides = [1, 1]} : vector<8x128xf32> to vector<1x128xf32>
    %70 = vector.broadcast %69 : vector<1x128xf32> to vector<8x128xf32>
    %71 = arith.addf %5, %70 : vector<8x128xf32>
    %cst_34 = arith.constant 0.000000e+00 : f32
    %72 = vector.broadcast %cst_34 : f32 to vector<8x128xf32>
    %73 = arith.maximumf %71, %72 : vector<8x128xf32>
    %cst_35 = arith.constant dense<0.000000e+00> : vector<8x128xf32>
    %74 = tpu.matmul %73, %8, %cst_35 {dimension_numbers = #tpu.dot_dimension_numbers<[1], [0], [0], [1], [0, 0, 1, 1], [], []>} : vector<8x128xf32>, vector<128x128xf32>, vector<8x128xf32> -> vector<8x128xf32>
    %cst_36 = arith.constant 0.000000e+00 : f32
    %75 = vector.broadcast %cst_36 : f32 to vector<8x128xf32>
    %76 = arith.maximumf %74, %75 : vector<8x128xf32>
    %77 = vector.extract_strided_slice %7 {offsets = [6, 0], sizes = [1, 8], strides = [1, 1]} : vector<8x8xf32> to vector<1x8xf32>
    %cst_37 = arith.constant dense<0.000000e+00> : vector<1x128xf32>
    %78 = tpu.matmul %77, %76, %cst_37 {dimension_numbers = #tpu.dot_dimension_numbers<[1], [0], [0], [1], [0, 0, 1, 1], [], []>} : vector<1x8xf32>, vector<8x128xf32>, vector<1x128xf32> -> vector<1x128xf32>
    %79 = vector.extract_strided_slice %6 {offsets = [7, 0], sizes = [1, 128], strides = [1, 1]} : vector<8x128xf32> to vector<1x128xf32>
    %80 = vector.broadcast %79 : vector<1x128xf32> to vector<8x128xf32>
    %81 = arith.addf %5, %80 : vector<8x128xf32>
    %cst_38 = arith.constant 0.000000e+00 : f32
    %82 = vector.broadcast %cst_38 : f32 to vector<8x128xf32>
    %83 = arith.maximumf %81, %82 : vector<8x128xf32>
    %cst_39 = arith.constant dense<0.000000e+00> : vector<8x128xf32>
    %84 = tpu.matmul %83, %8, %cst_39 {dimension_numbers = #tpu.dot_dimension_numbers<[1], [0], [0], [1], [0, 0, 1, 1], [], []>} : vector<8x128xf32>, vector<128x128xf32>, vector<8x128xf32> -> vector<8x128xf32>
    %cst_40 = arith.constant 0.000000e+00 : f32
    %85 = vector.broadcast %cst_40 : f32 to vector<8x128xf32>
    %86 = arith.maximumf %84, %85 : vector<8x128xf32>
    %87 = vector.extract_strided_slice %7 {offsets = [7, 0], sizes = [1, 8], strides = [1, 1]} : vector<8x8xf32> to vector<1x8xf32>
    %cst_41 = arith.constant dense<0.000000e+00> : vector<1x128xf32>
    %88 = tpu.matmul %87, %86, %cst_41 {dimension_numbers = #tpu.dot_dimension_numbers<[1], [0], [0], [1], [0, 0, 1, 1], [], []>} : vector<1x8xf32>, vector<8x128xf32>, vector<1x128xf32> -> vector<1x128xf32>
    %c0_42 = arith.constant 0 : index
    %c0_43 = arith.constant 0 : index
    %89 = vector.load %arg7[%c0_42, %c0_43] : memref<8x128xf32, #tpu.memory_space<vmem>>, vector<8x128xf32>
    %90 = tpu.concatenate %18, %28, %38, %48, %58, %68, %78, %88 in 0 : vector<1x128xf32>, vector<1x128xf32>, vector<1x128xf32>, vector<1x128xf32>, vector<1x128xf32>, vector<1x128xf32>, vector<1x128xf32>, vector<1x128xf32> -> vector<8x128xf32>
    %91 = arith.addf %89, %90 : vector<8x128xf32>
    %c0_44 = arith.constant 0 : index
    %c0_45 = arith.constant 0 : index
    %92 = vector.load %arg7[%c0_44, %c0_45] : memref<8x128xf32, #tpu.memory_space<vmem>>, vector<8x128xf32>
    tpu.vector_store %arg7[%c0_44, %c0_45], %91 {strides = array<i32>} : memref<8x128xf32, #tpu.memory_space<vmem>>, vector<8x128xf32>,
    return
  }
  func.func @transform_0(%arg0: i32, %arg1: i32) -> (i32, i32) {
    %c0_i32 = arith.constant 0 : i32
    %c0_i32_0 = arith.constant 0 : i32
    return %arg1, %c0_i32 : i32, i32
  }
  func.func @transform_1(%arg0: i32, %arg1: i32) -> (i32, i32) {
    %c0_i32 = arith.constant 0 : i32
    %c0_i32_0 = arith.constant 0 : i32
    return %arg0, %c0_i32 : i32, i32
  }
  func.func @transform_2(%arg0: i32, %arg1: i32) -> (i32, i32) {
    %c0_i32 = arith.constant 0 : i32
    return %arg0, %arg1 : i32, i32
  }
  func.func @transform_3(%arg0: i32, %arg1: i32) -> (i32, i32) {
    %c0_i32 = arith.constant 0 : i32
    %c0_i32_0 = arith.constant 0 : i32
    %c0_i32_1 = arith.constant 0 : i32
    return %c0_i32, %c0_i32_0 : i32, i32
  }
  func.func @transform_4(%arg0: i32, %arg1: i32) -> (i32, i32) {
    %c0_i32 = arith.constant 0 : i32
    %c0_i32_0 = arith.constant 0 : i32
    %c0_i32_1 = arith.constant 0 : i32
    return %c0_i32, %c0_i32_0 : i32, i32
  }
  func.func @transform_5(%arg0: i32, %arg1: i32) -> (i32, i32) {
    %c0_i32 = arith.constant 0 : i32
    %c0_i32_0 = arith.constant 0 : i32
    return %arg0, %c0_i32 : i32, i32
  }
}

</mosaic_0001>

<bundles_post_ra>
// kernel: tpu_custom_call.1
= control target key start
LH: loop header
LB: loop body
LE: loop exit
PB: predicated region body
PF: predicated region fallthrough
CT: control target
= control target key end

     0   :  { %10 = vsyncpa [#allocation3], 0  ;;  %s2425_s0 = inlined_call_operand.vmem [shape: f32[8,4], index: 0, kind: input, shape index: {}]   ;;  %s2426_s1 = inlined_call_operand.vmem [shape: f32[8,128], index: 1, kind: input, shape index: {}]   ;;  %s2427_s2 = inlined_call_operand.vmem [shape: f32[8,8], index: 2, kind: input, shape index: {}]   ;;  %s2428_s3 = inlined_call_operand.vmem [shape: f32[4,128], index: 3, kind: input, shape index: {}]   ;;  %s2429_s4 = inlined_call_operand.hbm [shape: f32[128,128], index: 4, kind: input, shape index: {}]   ;;  %s2430_s5 = inlined_call_operand.hbm [shape: f32[8,128], index: 5, kind: output, shape index: {}]  }
   0x1   :  { %11 = vsyncpa [#allocation4], 0  ;;  %s2127_s18 = smov [#allocation2]   ;;  %s2079_s22 = scalar_lea.hbm %s2429_s4, 2048 }
   0x2   :  { %s25_s19 = sshll.u32 %s2127_s18, 4  ;;  %p2080_p0 = scmp.ne.s32.totalorder %s2429_s4, %s2079_s22  ;;  %s26_s19 = int_to_ptr.vmem [resolvable:$true] %s25_s19 }
   0x3   :  { %p2083_p1 = scmp.lt.u32.totalorder %s2079_s22, %s2429_s4 }
   0x5   :  { %p2085_p2 = pnand %p2083_p1, %p2080_p0 }
   0x7   :  { %2088 = shalt.err (!%p2085_p2)
}
   0x8   :  { %s2089_s27 = scalar_lea.vmem %s26_s19, 2048  ;;  %p2094_p4 = scmp.lt.s32.totalorder %s26_s19, %s26_s19 }
   0x9   :  { %p2090_p3 = scmp.ne.s32.totalorder %s26_s19, %s2089_s27  ;;  %p2095_p5 = scmp.lt.s32.totalorder %s2089_s27, %s2089_s27 }
   0xb   :  { %p2096_p6 = por %p2095_p5, %p2094_p4 }
   0xd   :  { %p2097_p7 = pnand %p2096_p6, %p2090_p3 }
   0xf   :  { %2100 = shalt.err (!%p2097_p7)
}
  0x10   :  { %s2128_s28 = smov 128   ;;  %s2129_s29 = smov 8  }
  0x11   :  { %31 = dma.hbm_to_vmem [thread:$0]  %s2429_s4, 2048, %s26_s19, [#allocation3], %s2128_s28, %s2128_s28, %s2129_s29  }
  0x12   :  { %2123 = dma.done.wait [#allocation3], 2048  }
  0x13   :  { %2124 = vsyncadd [#allocation3], 4294965248  ;;  %v2130_v0 = vmov 0.0   ;;  %vm2131_vm0 = vmmov 0   ;;  %v2132_v1 = vmov 0.0|0.0   ;;  %vm46_vm1 = vcmask 1043456  }
  0x14   :  { %1555 = vmatprep.subr.mxu0 %v2130_v0  ;;  %1557 = vmatprep.mubr.msk.f32.mxu0 %vm2131_vm0, %v2130_v0  ;;  %vm42_vm2 = vcmask 31744   ;;  %v41_v2 = vld [vmem:[%s2428_s3] sm:$0xf]  ;;  %v122_v4 = vld [vmem:[#allocation2] sm:$0xff]  ;;  %v123_v5 = vld [vmem:[#allocation2 + $0x8] sm:$0xff]  ;;  %v138_v25 = vlaneseq  ;;  %vm215_vm3 = vcmask 64512  }
  0x15   :  { %1880 = vmatprep.subr.bf16.mxu1 %v2132_v1  ;;  %1592 = vmatprep.mubr.msk.f32.mxu1 %vm2131_vm0, %v2130_v0  ;;  %v40_v3 = vld [vmem:[%s2425_s0] sm:$0xff]  ;;  %v125_v7 = vld [vmem:[#allocation2 + $0x18] sm:$0xff]  ;;  %v2189_v8 = vpack.c.bf16 %v123_v5, %v122_v4  ;;  %v126_v10 = vld [vmem:[#allocation2 + $0x20] sm:$0xff]  ;;  %vm1361_vm4 = vcmask 1040384   ;;  %vm1363_vm5 = vcmask 1041408   ;;  %vm1365_vm6 = vcmask 1042432  }
  0x16   :  { %1556 = vmatpush3.msk.msra.mxu0 %vm46_vm1, %v41_v2  ;;  %v124_v6 = vld [vmem:[#allocation2 + $0x10] sm:$0xff]  ;;  %v127_v11 = vld [vmem:[#allocation2 + $0x28] sm:$0xff]  ;;  %v129_v14 = vld [vmem:[#allocation2 + $0x38] sm:$0xff]  ;;  %v139_v26 = vshrl.u32 %v138_v25, 7  ;;  %vm1368_vm7 = vcmask 1044480   ;;  %vm1370_vm8 = vcmask 1045504  }
  0x17   :  { %1558 = vmatmul.mubr.msk.f32.vlgmr.msra.gmra.mrb[0].mxu0 %vm42_vm2, %v40_v3  ;;  %1595 = vmatprep.subr.mxu0 %v2130_v0  ;;  %v2195_v9 = vpack.c.bf16 %v125_v7, %v124_v6  ;;  %v2199_v12 = vpack.c.bf16 %v127_v11, %v126_v10  ;;  %v128_v13 = vld [vmem:[#allocation2 + $0x30] sm:$0xff]  ;;  %v130_v16 = vld [vmem:[#allocation2 + $0x40] sm:$0xff]  ;;  %v131_v17 = vld [vmem:[#allocation2 + $0x48] sm:$0xff]  ;;  %vm1372_vm9 = vcmask 1046528  }
  0x18   :  { %1597 = vmatprep.mubr.msk.f32.mxu0 %vm2131_vm0, %v2130_v0  ;;  %1882 = vmatpush3.bf16.msra.mxu1 %v2189_v8  ;;  %v2203_v15 = vpack.c.bf16 %v129_v14, %v128_v13  ;;  %v2207_v18 = vpack.c.bf16 %v131_v17, %v130_v16  ;;  %v132_v19 = vld [vmem:[#allocation2 + $0x50] sm:$0xff]  ;;  %v133_v20 = vld [vmem:[#allocation2 + $0x58] sm:$0xff]  ;;  %v134_v22 = vld [vmem:[#allocation2 + $0x60] sm:$0xff]  ;;  %v291_v27 = vsub.s32 1, %v139_v26  ;;  %v441_v28 = vsub.s32 2, %v139_v26 }
  0x19   :  { %1883 = vmatprep.subr.bf16.mxu1 %v2132_v1  ;;  %v2211_v21 = vpack.c.bf16 %v133_v20, %v132_v19  ;;  %v135_v23 = vld [vmem:[#allocation2 + $0x68] sm:$0xff]  ;;  %v591_v29 = vsub.s32 3, %v139_v26  ;;  %v120_v30 = vld [vmem:[%s2426_s1] sm:$0xff]  ;;  %v741_v31 = vsub.s32 4, %v139_v26  ;;  %v891_v32 = vsub.s32 5, %v139_v26  ;;  %v137_v36 = vld [vmem:[#allocation2 + $0x78] sm:$0xff] }
  0x1a   :  { %v2215_v24 = vpack.c.bf16 %v135_v23, %v134_v22  ;;  %v1041_v33 = vsub.s32 6, %v139_v26  ;;  %v1191_v34 = vsub.s32 7, %v139_v26  ;;  %v136_v35 = vld [vmem:[#allocation2 + $0x70] sm:$0xff]  ;;  %v292_v37 = vrot.slane %v120_v30, %v291_v27 }
  0x1b   :  { %v442_v38 = vrot.slane %v120_v30, %v441_v28  ;;  %v592_v39 = vrot.slane %v120_v30, %v591_v29  ;;  %v2223_v40 = vpack.c.bf16 %v137_v36, %v136_v35  ;;  %v742_v41 = vrot.slane %v120_v30, %v741_v31  ;;  %v2244_v61 = vld [vmem:[%s2427_s2] sm:$0xff]  ;;  %s2133_s2 = smov [#allocation5]  }
  0x1c   :  { %1885 = vmatpush3.bf16.msra.mxu1 %v2195_v9  ;;  %v892_v42 = vrot.slane %v120_v30, %v891_v32  ;;  %v1042_v43 = vrot.slane %v120_v30, %v1041_v33  ;;  %v1192_v44 = vrot.slane %v120_v30, %v1191_v34  ;;  %v140_v45 = vsub.s32 0, %v139_v26  ;;  %s1382_s11 = sshll.u32 %s2133_s2, 4  ;;  %s1383_s11 = int_to_ptr.vmem [resolvable:$true] %s1382_s11 }
  0x1d   :  { %1886 = vmatprep.subr.bf16.mxu1 %v2132_v1  ;;  %v366_v4 = vrot.slane %v2244_v61, 1  ;;  %v516_v17 = vrot.slane %v2244_v61, 2  ;;  %v666_v29 = vrot.slane %v2244_v61, 3  ;;  %s2101_s12 = scalar_lea.vmem %s1383_s11, 128  ;;  %p2106_p9 = scmp.lt.s32.totalorder %s1383_s11, %s1383_s11 }
  0x1e   :  { %v141_v46 = vrot.slane %v120_v30, %v140_v45  ;;  %p2102_p8 = scmp.ne.s32.totalorder %s1383_s11, %s2101_s12  ;;  %p2107_p10 = scmp.lt.s32.totalorder %s2101_s12, %s2101_s12 }
  0x20   :  { %1888 = vmatpush3.bf16.msra.mxu1 %v2199_v12  ;;  %p2108_p11 = por %p2107_p10, %p2106_p9 }
  0x21   :  { %1889 = vmatprep.subr.bf16.mxu1 %v2132_v1 }
  0x22   :  { %p2109_p12 = pnand %p2108_p11, %p2102_p8 }
  0x24   :  { %1891 = vmatpush3.bf16.msra.mxu1 %v2203_v15 }
  0x25   :  { %1892 = vmatprep.subr.bf16.mxu1 %v2132_v1 }
  0x28   :  { %1894 = vmatpush3.bf16.msra.mxu1 %v2207_v18 }
  0x29   :  { %1895 = vmatprep.subr.bf16.mxu1 %v2132_v1 }
  0x2c   :  { %1897 = vmatpush3.bf16.msra.mxu1 %v2211_v21 }
  0x2d   :  { %1898 = vmatprep.subr.bf16.mxu1 %v2132_v1 }
  0x30   :  { %1900 = vmatpush3.bf16.msra.mxu1 %v2215_v24 }
  0x31   :  { %1901 = vmatprep.subr.bf16.mxu1 %v2132_v1 }
  0x34   :  { %1903 = vmatpush3.bf16.msra.mxu1 %v2223_v40 }
  0x35   :  { %1635 = vmatprep.subr.mxu1 %v2130_v0 }
  0xea   :  { %v116_v47 = vpop.f32.mrb[0].mxu0 }
  0xeb   :  { %v1559_v48 = vpop.f32.mrb[1].mxu0  ;;  %v142_v49 = vadd.f32 %v141_v46, %v116_v47  ;;  %v293_v50 = vadd.f32 %v292_v37, %v116_v47  ;;  %v2227_v51 = vadd.f32 %v442_v38, %v116_v47  ;;  %v2229_v52 = vadd.f32 %v592_v39, %v116_v47 }
  0xec   :  { %v2231_v53 = vadd.f32 %v742_v41, %v116_v47  ;;  %v2233_v54 = vadd.f32 %v892_v42, %v116_v47  ;;  %v2235_v55 = vadd.f32 %v1042_v43, %v116_v47  ;;  %v2237_v56 = vadd.f32 %v1192_v44, %v116_v47 }
  0xed   :  { %v143_v57 = vmax.f32 %v142_v49, 0.0  ;;  %v294_v62 = vmax.f32 %v293_v50, 0.0  ;;  %v444_v7 = vmax.f32 %v2227_v51, 0.0  ;;  %v594_v22 = vmax.f32 %v2229_v52, 0.0 }
  0xee   :  { %v744_v32 = vmax.f32 %v2231_v53, 0.0  ;;  %v816_v38 = vrot.slane %v2244_v61, 4  ;;  %v894_v42 = vmax.f32 %v2233_v54, 0.0  ;;  %v966_v48 = vrot.slane %v2244_v61, 5 }
  0xef   :  { %1593 = vmatmul.mubr.f32.vlgmr.msra.gmra.mrb[0].mxu1 %v143_v57  ;;  %v1044_v51 = vmax.f32 %v2235_v55, 0.0  ;;  %v1266_v55 = vrot.slane %v2244_v61, 7 }
  0xf0   :  { %1637 = vmatprep.mubr.msk.f32.mxu1 %vm2131_vm0, %v2130_v0 }
 0x1c2   :  { %v210_v58 = vpop.f32.mrb[0].mxu1 }
 0x1c3   :  { %v214_v59 = vmax.f32 %v210_v58, 0.0  ;;  %v1594_v60 = vpop.f32.mrb[1].mxu1 }
 0x1c5   :  { %1596 = vmatpush3.msra.mxu0 %v214_v59  ;;  %v1116_v59 = vrot.slane %v2244_v61, 6 }
 0x1c6   :  { %1598 = vmatmul.mubr.msk.f32.vlgmr.msra.gmra.mrb[2].mxu0 %vm215_vm3, %v2244_v61  ;;  %1904 = vmatprep.subr.bf16.mxu0 %v2132_v1 }
 0x1c7   :  { %1906 = vmatpush3.bf16.msra.mxu0 %v2189_v8  ;;  %1632 = vmatprep.mubr.msk.f32.mxu0 %vm2131_vm0, %v2130_v0 }
 0x1c8   :  { %1907 = vmatprep.subr.bf16.mxu0 %v2132_v1 }
 0x1cb   :  { %1909 = vmatpush3.bf16.msra.mxu0 %v2195_v9 }
 0x1cc   :  { %1910 = vmatprep.subr.bf16.mxu0 %v2132_v1 }
 0x1cf   :  { %1912 = vmatpush3.bf16.msra.mxu0 %v2199_v12 }
 0x1d0   :  { %1913 = vmatprep.subr.bf16.mxu0 %v2132_v1 }
 0x1d3   :  { %1915 = vmatpush3.bf16.msra.mxu0 %v2203_v15 }
 0x1d4   :  { %1916 = vmatprep.subr.bf16.mxu0 %v2132_v1 }
 0x1d7   :  { %1918 = vmatpush3.bf16.msra.mxu0 %v2207_v18 }
 0x1d8   :  { %1919 = vmatprep.subr.bf16.mxu0 %v2132_v1 }
 0x1db   :  { %1921 = vmatpush3.bf16.msra.mxu0 %v2211_v21 }
 0x1dc   :  { %1922 = vmatprep.subr.bf16.mxu0 %v2132_v1 }
 0x1df   :  { %1924 = vmatpush3.bf16.msra.mxu0 %v2215_v24 }
 0x1e0   :  { %1925 = vmatprep.subr.bf16.mxu0 %v2132_v1 }
 0x1e3   :  { %1927 = vmatpush3.bf16.msra.mxu0 %v2223_v40 }
 0x1e4   :  { %1675 = vmatprep.subr.mxu0 %v2130_v0 }
 0x1e6   :  { %1633 = vmatmul.mubr.f32.vlgmr.msra.gmra.mrb[4].mxu0 %v294_v62 }
 0x1e7   :  { %1677 = vmatprep.mubr.msk.f32.mxu0 %vm2131_vm0, %v2130_v0 }
 0x299   :  { %v285_v63 = vpop.f32.mrb[2].mxu0 }
 0x29a   :  { %v1599_v2 = vpop.f32.mrb[3].mxu0 }
 0x2b9   :  { %v361_v3 = vpop.f32.mrb[4].mxu0 }
 0x2ba   :  { %v365_v5 = vmax.f32 %v361_v3, 0.0  ;;  %v1634_v6 = vpop.f32.mrb[5].mxu0 }
 0x2bc   :  { %1636 = vmatpush3.msra.mxu1 %v365_v5 }
 0x2bd   :  { %1638 = vmatmul.mubr.msk.f32.vlgmr.msra.gmra.mrb[2].mxu1 %vm215_vm3, %v366_v4  ;;  %1928 = vmatprep.subr.bf16.mxu1 %v2132_v1 }
 0x2be   :  { %1930 = vmatpush3.bf16.msra.mxu1 %v2189_v8  ;;  %1672 = vmatprep.mubr.msk.f32.mxu1 %vm2131_vm0, %v2130_v0 }
 0x2bf   :  { %1931 = vmatprep.subr.bf16.mxu1 %v2132_v1 }
 0x2c2   :  { %1933 = vmatpush3.bf16.msra.mxu1 %v2195_v9 }
 0x2c3   :  { %1934 = vmatprep.subr.bf16.mxu1 %v2132_v1 }
 0x2c6   :  { %1936 = vmatpush3.bf16.msra.mxu1 %v2199_v12 }
 0x2c7   :  { %1937 = vmatprep.subr.bf16.mxu1 %v2132_v1 }
 0x2ca   :  { %1939 = vmatpush3.bf16.msra.mxu1 %v2203_v15 }
 0x2cb   :  { %1940 = vmatprep.subr.bf16.mxu1 %v2132_v1 }
 0x2ce   :  { %1942 = vmatpush3.bf16.msra.mxu1 %v2207_v18 }
 0x2cf   :  { %1943 = vmatprep.subr.bf16.mxu1 %v2132_v1 }
 0x2d2   :  { %1945 = vmatpush3.bf16.msra.mxu1 %v2211_v21 }
 0x2d3   :  { %1946 = vmatprep.subr.bf16.mxu1 %v2132_v1 }
 0x2d6   :  { %1948 = vmatpush3.bf16.msra.mxu1 %v2215_v24 }
 0x2d7   :  { %1949 = vmatprep.subr.bf16.mxu1 %v2132_v1 }
 0x2da   :  { %1951 = vmatpush3.bf16.msra.mxu1 %v2223_v40 }
 0x2db   :  { %1715 = vmatprep.subr.mxu1 %v2130_v0 }
 0x2dd   :  { %1673 = vmatmul.mubr.f32.vlgmr.msra.gmra.mrb[4].mxu1 %v444_v7 }
 0x2de   :  { %1717 = vmatprep.mubr.msk.f32.mxu1 %vm2131_vm0, %v2130_v0 }
 0x390   :  { %v435_v10 = vpop.f32.mrb[2].mxu1 }
 0x391   :  { %v1341_v11 = vrot.slane %v435_v10, 7  ;;  %v1639_v13 = vpop.f32.mrb[3].mxu1 }
 0x393   :  { %v1362_v14 = vsel %vm1361_vm4, %v285_v63, %v1341_v11 }
 0x3b0   :  { %v511_v16 = vpop.f32.mrb[4].mxu1 }
 0x3b1   :  { %v515_v19 = vmax.f32 %v511_v16, 0.0  ;;  %v1674_v20 = vpop.f32.mrb[5].mxu1 }
 0x3b3   :  { %1676 = vmatpush3.msra.mxu0 %v515_v19 }
 0x3b4   :  { %1678 = vmatmul.mubr.msk.f32.vlgmr.msra.gmra.mrb[6].mxu0 %vm215_vm3, %v516_v17  ;;  %1952 = vmatprep.subr.bf16.mxu0 %v2132_v1 }
 0x3b5   :  { %1954 = vmatpush3.bf16.msra.mxu0 %v2189_v8  ;;  %1712 = vmatprep.mubr.msk.f32.mxu0 %vm2131_vm0, %v2130_v0 }
 0x3b6   :  { %1955 = vmatprep.subr.bf16.mxu0 %v2132_v1 }
 0x3b9   :  { %1957 = vmatpush3.bf16.msra.mxu0 %v2195_v9 }
 0x3ba   :  { %1958 = vmatprep.subr.bf16.mxu0 %v2132_v1 }
 0x3bd   :  { %1960 = vmatpush3.bf16.msra.mxu0 %v2199_v12 }
 0x3be   :  { %1961 = vmatprep.subr.bf16.mxu0 %v2132_v1 }
 0x3c1   :  { %1963 = vmatpush3.bf16.msra.mxu0 %v2203_v15 }
 0x3c2   :  { %1964 = vmatprep.subr.bf16.mxu0 %v2132_v1 }
 0x3c5   :  { %1966 = vmatpush3.bf16.msra.mxu0 %v2207_v18 }
 0x3c6   :  { %1967 = vmatprep.subr.bf16.mxu0 %v2132_v1 }
 0x3c9   :  { %1969 = vmatpush3.bf16.msra.mxu0 %v2211_v21 }
 0x3ca   :  { %1970 = vmatprep.subr.bf16.mxu0 %v2132_v1 }
 0x3cd   :  { %1972 = vmatpush3.bf16.msra.mxu0 %v2215_v24 }
 0x3ce   :  { %1973 = vmatprep.subr.bf16.mxu0 %v2132_v1 }
 0x3d1   :  { %1975 = vmatpush3.bf16.msra.mxu0 %v2223_v40 }
 0x3d2   :  { %1755 = vmatprep.subr.mxu0 %v2130_v0 }
 0x3d4   :  { %1713 = vmatmul.mubr.f32.vlgmr.msra.gmra.mrb[8].mxu0 %v594_v22 }
 0x3d5   :  { %1757 = vmatprep.mubr.msk.f32.mxu0 %vm2131_vm0, %v2130_v0 }
 0x487   :  { %v585_v23 = vpop.f32.mrb[6].mxu0 }
 0x488   :  { %v1344_v25 = vrot.slane %v585_v23, 6  ;;  %v1679_v26 = vpop.f32.mrb[7].mxu0 }
 0x48a   :  { %v1364_v27 = vsel %vm1363_vm5, %v1362_v14, %v1344_v25 }
 0x4a7   :  { %v661_v28 = vpop.f32.mrb[8].mxu0 }
 0x4a8   :  { %v665_v30 = vmax.f32 %v661_v28, 0.0  ;;  %v1714_v31 = vpop.f32.mrb[9].mxu0 }
 0x4aa   :  { %1716 = vmatpush3.msra.mxu1 %v665_v30 }
 0x4ab   :  { %1718 = vmatmul.mubr.msk.f32.vlgmr.msra.gmra.mrb[6].mxu1 %vm215_vm3, %v666_v29  ;;  %1976 = vmatprep.subr.bf16.mxu1 %v2132_v1 }
 0x4ac   :  { %1978 = vmatpush3.bf16.msra.mxu1 %v2189_v8  ;;  %1752 = vmatprep.mubr.msk.f32.mxu1 %vm2131_vm0, %v2130_v0 }
 0x4ad   :  { %1979 = vmatprep.subr.bf16.mxu1 %v2132_v1 }
 0x4b0   :  { %1981 = vmatpush3.bf16.msra.mxu1 %v2195_v9 }
 0x4b1   :  { %1982 = vmatprep.subr.bf16.mxu1 %v2132_v1 }
 0x4b4   :  { %1984 = vmatpush3.bf16.msra.mxu1 %v2199_v12 }
 0x4b5   :  { %1985 = vmatprep.subr.bf16.mxu1 %v2132_v1 }
 0x4b8   :  { %1987 = vmatpush3.bf16.msra.mxu1 %v2203_v15 }
 0x4b9   :  { %1988 = vmatprep.subr.bf16.mxu1 %v2132_v1 }
 0x4bc   :  { %1990 = vmatpush3.bf16.msra.mxu1 %v2207_v18 }
 0x4bd   :  { %1991 = vmatprep.subr.bf16.mxu1 %v2132_v1 }
 0x4c0   :  { %1993 = vmatpush3.bf16.msra.mxu1 %v2211_v21 }
 0x4c1   :  { %1994 = vmatprep.subr.bf16.mxu1 %v2132_v1 }
 0x4c4   :  { %1996 = vmatpush3.bf16.msra.mxu1 %v2215_v24 }
 0x4c5   :  { %1997 = vmatprep.subr.bf16.mxu1 %v2132_v1 }
 0x4c8   :  { %1999 = vmatpush3.bf16.msra.mxu1 %v2223_v40 }
 0x4c9   :  { %1795 = vmatprep.subr.mxu1 %v2130_v0 }
 0x4cb   :  { %1753 = vmatmul.mubr.f32.vlgmr.msra.gmra.mrb[8].mxu1 %v744_v32 }
 0x4cc   :  { %1797 = vmatprep.mubr.msk.f32.mxu1 %vm2131_vm0, %v2130_v0 }
 0x57e   :  { %v735_v33 = vpop.f32.mrb[6].mxu1 }
 0x57f   :  { %v1347_v34 = vrot.slane %v735_v33, 5  ;;  %v1719_v35 = vpop.f32.mrb[7].mxu1 }
 0x581   :  { %v1366_v36 = vsel %vm1365_vm6, %v1364_v27, %v1347_v34 }
 0x59e   :  { %v811_v37 = vpop.f32.mrb[8].mxu1 }
 0x59f   :  { %v815_v39 = vmax.f32 %v811_v37, 0.0  ;;  %v1754_v41 = vpop.f32.mrb[9].mxu1 }
 0x5a1   :  { %1756 = vmatpush3.msra.mxu0 %v815_v39 }
 0x5a2   :  { %1758 = vmatmul.mubr.msk.f32.vlgmr.msra.gmra.mrb[10].mxu0 %vm215_vm3, %v816_v38  ;;  %2000 = vmatprep.subr.bf16.mxu0 %v2132_v1 }
 0x5a3   :  { %2002 = vmatpush3.bf16.msra.mxu0 %v2189_v8  ;;  %1792 = vmatprep.mubr.msk.f32.mxu0 %vm2131_vm0, %v2130_v0 }
 0x5a4   :  { %2003 = vmatprep.subr.bf16.mxu0 %v2132_v1 }
 0x5a7   :  { %2005 = vmatpush3.bf16.msra.mxu0 %v2195_v9 }
 0x5a8   :  { %2006 = vmatprep.subr.bf16.mxu0 %v2132_v1 }
 0x5ab   :  { %2008 = vmatpush3.bf16.msra.mxu0 %v2199_v12 }
 0x5ac   :  { %2009 = vmatprep.subr.bf16.mxu0 %v2132_v1 }
 0x5af   :  { %2011 = vmatpush3.bf16.msra.mxu0 %v2203_v15 }
 0x5b0   :  { %2012 = vmatprep.subr.bf16.mxu0 %v2132_v1 }
 0x5b3   :  { %2014 = vmatpush3.bf16.msra.mxu0 %v2207_v18 }
 0x5b4   :  { %2015 = vmatprep.subr.bf16.mxu0 %v2132_v1 }
 0x5b7   :  { %2017 = vmatpush3.bf16.msra.mxu0 %v2211_v21 }
 0x5b8   :  { %2018 = vmatprep.subr.bf16.mxu0 %v2132_v1 }
 0x5bb   :  { %2020 = vmatpush3.bf16.msra.mxu0 %v2215_v24 }
 0x5bc   :  { %2021 = vmatprep.subr.bf16.mxu0 %v2132_v1 }
 0x5bf   :  { %2023 = vmatpush3.bf16.msra.mxu0 %v2223_v40 }
 0x5c0   :  { %1835 = vmatprep.subr.mxu0 %v2130_v0 }
 0x5c2   :  { %1793 = vmatmul.mubr.f32.vlgmr.msra.gmra.mrb[12].mxu0 %v894_v42 }
 0x5c3   :  { %1837 = vmatprep.mubr.msk.f32.mxu0 %vm2131_vm0, %v2130_v0 }
 0x675   :  { %v885_v43 = vpop.f32.mrb[10].mxu0 }
 0x676   :  { %v1350_v44 = vrot.slane %v885_v43, 4  ;;  %v1759_v45 = vpop.f32.mrb[11].mxu0 }
 0x678   :  { %v1367_v46 = vsel %vm46_vm1, %v1366_v36, %v1350_v44 }
 0x695   :  { %v961_v47 = vpop.f32.mrb[12].mxu0 }
 0x696   :  { %v965_v49 = vmax.f32 %v961_v47, 0.0  ;;  %v1794_v50 = vpop.f32.mrb[13].mxu0 }
 0x698   :  { %1796 = vmatpush3.msra.mxu1 %v965_v49 }
 0x699   :  { %1798 = vmatmul.mubr.msk.f32.vlgmr.msra.gmra.mrb[10].mxu1 %vm215_vm3, %v966_v48  ;;  %2024 = vmatprep.subr.bf16.mxu1 %v2132_v1 }
 0x69a   :  { %2026 = vmatpush3.bf16.msra.mxu1 %v2189_v8  ;;  %1832 = vmatprep.mubr.msk.f32.mxu1 %vm2131_vm0, %v2130_v0 }
 0x69b   :  { %2027 = vmatprep.subr.bf16.mxu1 %v2132_v1 }
 0x69e   :  { %2029 = vmatpush3.bf16.msra.mxu1 %v2195_v9 }
 0x69f   :  { %2030 = vmatprep.subr.bf16.mxu1 %v2132_v1 }
 0x6a2   :  { %2032 = vmatpush3.bf16.msra.mxu1 %v2199_v12 }
 0x6a3   :  { %2033 = vmatprep.subr.bf16.mxu1 %v2132_v1 }
 0x6a6   :  { %2035 = vmatpush3.bf16.msra.mxu1 %v2203_v15 }
 0x6a7   :  { %2036 = vmatprep.subr.bf16.mxu1 %v2132_v1 }
 0x6aa   :  { %2038 = vmatpush3.bf16.msra.mxu1 %v2207_v18 }
 0x6ab   :  { %2039 = vmatprep.subr.bf16.mxu1 %v2132_v1 }
 0x6ae   :  { %2041 = vmatpush3.bf16.msra.mxu1 %v2211_v21 }
 0x6af   :  { %2042 = vmatprep.subr.bf16.mxu1 %v2132_v1 }
 0x6b2   :  { %2044 = vmatpush3.bf16.msra.mxu1 %v2215_v24 }
 0x6b3   :  { %2045 = vmatprep.subr.bf16.mxu1 %v2132_v1 }
 0x6b6   :  { %2047 = vmatpush3.bf16.msra.mxu1 %v2223_v40 }
 0x6b7   :  { %1875 = vmatprep.subr.mxu1 %v2130_v0 }
 0x6b9   :  { %1833 = vmatmul.mubr.f32.vlgmr.msra.gmra.mrb[12].mxu1 %v1044_v51 }
 0x6ba   :  { %1877 = vmatprep.mubr.msk.f32.mxu1 %vm2131_vm0, %v2130_v0 }
 0x76c   :  { %v1035_v52 = vpop.f32.mrb[10].mxu1 }
 0x76d   :  { %v1353_v53 = vrot.slane %v1035_v52, 3  ;;  %v1799_v54 = vpop.f32.mrb[11].mxu1 }
 0x76f   :  { %v1369_v57 = vsel %vm1368_vm7, %v1367_v46, %v1353_v53 }
 0x78c   :  { %v1111_v58 = vpop.f32.mrb[12].mxu1 }
 0x78d   :  { %v1115_v60 = vmax.f32 %v1111_v58, 0.0  ;;  %v1834_v62 = vpop.f32.mrb[13].mxu1 }
 0x78f   :  { %1836 = vmatpush3.msra.mxu0 %v1115_v60 }
 0x790   :  { %1838 = vmatmul.mubr.msk.f32.vlgmr.msra.gmra.mrb[14].mxu0 %vm215_vm3, %v1116_v59  ;;  %2048 = vmatprep.subr.bf16.mxu0 %v2132_v1 }
 0x791   :  { %2050 = vmatpush3.bf16.msra.mxu0 %v2189_v8  ;;  %1872 = vmatprep.mubr.msk.f32.mxu0 %vm2131_vm0, %v2130_v0  ;;  %v1194_v0 = vmax.f32 %v2237_v56, 0.0 }
 0x792   :  { %2051 = vmatprep.subr.bf16.mxu0 %v2132_v1 }
 0x795   :  { %2053 = vmatpush3.bf16.msra.mxu0 %v2195_v9 }
 0x796   :  { %2054 = vmatprep.subr.bf16.mxu0 %v2132_v1 }
 0x799   :  { %2056 = vmatpush3.bf16.msra.mxu0 %v2199_v12 }
 0x79a   :  { %2057 = vmatprep.subr.bf16.mxu0 %v2132_v1 }
 0x79d   :  { %2059 = vmatpush3.bf16.msra.mxu0 %v2203_v15 }
 0x79e   :  { %2060 = vmatprep.subr.bf16.mxu0 %v2132_v1 }
 0x7a1   :  { %2062 = vmatpush3.bf16.msra.mxu0 %v2207_v18 }
 0x7a2   :  { %2063 = vmatprep.subr.bf16.mxu0 %v2132_v1 }
 0x7a5   :  { %2065 = vmatpush3.bf16.msra.mxu0 %v2211_v21 }
 0x7a6   :  { %2066 = vmatprep.subr.bf16.mxu0 %v2132_v1 }
 0x7a9   :  { %2068 = vmatpush3.bf16.msra.mxu0 %v2215_v24 }
 0x7aa   :  { %2069 = vmatprep.subr.bf16.mxu0 %v2132_v1 }
 0x7ad   :  { %2071 = vmatpush3.bf16.msra.mxu0 %v2223_v40 }
 0x7b0   :  { %1873 = vmatmul.mubr.f32.vlgmr.msra.gmra.mrb[16].mxu0 %v1194_v0 }
 0x863   :  { %v1185_v8 = vpop.f32.mrb[14].mxu0 }
 0x864   :  { %v1356_v9 = vrot.slane %v1185_v8, 2  ;;  %v1839_v12 = vpop.f32.mrb[15].mxu0 }
 0x866   :  { %v1371_v15 = vsel %vm1370_vm8, %v1369_v57, %v1356_v9 }
 0x883   :  { %v1261_v18 = vpop.f32.mrb[16].mxu0 }
 0x884   :  { %v1265_v21 = vmax.f32 %v1261_v18, 0.0  ;;  %v1874_v63 = vpop.f32.mrb[17].mxu0 }
 0x886   :  { %1876 = vmatpush3.msra.mxu1 %v1265_v21 }
 0x887   :  { %1878 = vmatmul.mubr.msk.f32.vlgmr.msra.gmra.mrb[14].mxu1 %vm215_vm3, %v1266_v55 }
 0x95a   :  { %v1335_v24 = vpop.f32.mrb[14].mxu1 }
 0x95b   :  { %v1359_v1 = vrot.slane %v1335_v24, 1  ;;  %v1879_v40 = vpop.f32.mrb[15].mxu1 }
 0x95d   :  { %v1373_v56 = vsel %vm1372_vm9, %v1371_v15, %v1359_v1 }
 0x95e   :  { %1375 = vst [vmem:[#allocation5] sm:$0xff] %v1373_v56 }
 0x95f   :  { %2112 = shalt.err (!%p2109_p12)
}
 0x960   :  { %s2113_s15 = scalar_lea.hbm %s2430_s5, 128 }
 0x961   :  { %p2114_p13 = scmp.ne.s32.totalorder %s2430_s5, %s2113_s15  ;;  %p2117_p0 = scmp.lt.u32.totalorder %s2113_s15, %s2430_s5 }
 0x963   :  { %p2119_p1 = pnand %p2117_p0, %p2114_p13 }
 0x965   :  { %2122 = shalt.err (!%p2119_p1)
}
 0x966   :  { %1385 = dma.vmem_to_hbm [thread:$0]  %s1383_s11, 128, %s2430_s5, [#allocation4]  }
 0x967   :  { %2125 = dma.done.wait [#allocation4], 128  }
 0x968   :  { %2126 = vsyncadd [#allocation4], 4294967168 }
 0x969   :  { %1389 = vsyncpa [#allocation3], 1 }
 0x96a   :  { %1390 = vsyncpa [#allocation4], 1 }

</bundles_post_ra>
